<compile_context>
chip_gen: v7x
topology: tpu7x:2x2x1
jax: 0.10.0
libtpu: 0.0.40
codegen_flags: <defaults>
</compile_context>

<pallas_src>
import jax
import jax.numpy as jnp
from jax.experimental import pallas as pl
from jax.experimental.pallas import tpu as pltpu

FEAT_C = 2048  # resnet152 fc.in_features


def _round_up(x, m):
    return (x + m - 1) // m * m


def _vmem_capacity_bytes():
    """Generation-aware VMEM capacity; conservative fallback = 64 MiB (v7x/TC)."""
    try:
        info = pltpu.get_tpu_info()
        cap = getattr(info, "vmem_capacity_bytes", None)
        if cap:
            return int(cap)
    except Exception:
        pass
    return 64 << 20


def _basenet3_head_kernel(x_ref, wfc_ref, bfc_ref, w1_ref, b1_ref,
                          w2_ref, b2_ref, o_ref, acc_ref):
    # Grid = (batch_tiles, c_chunks); C-chunk reduction axis is last.
    c = pl.program_id(1)

    @pl.when(c == 0)
    def _():
        acc_ref[...] = jnp.zeros_like(acc_ref)

    # x_ref: [TB, HW, Cc] channels-last tile.  Sublane (HW) sum with f32
    # accumulation -- no full-tile f32 temp even for bf16 streams.
    pooled = jnp.sum(x_ref[...], axis=1, dtype=jnp.float32)      # [TB, Cc]

    # Partial model.fc contribution for this C chunk (1/HW folded into Wfc).
    acc_ref[...] += jnp.dot(pooled, wfc_ref[...],
                            preferred_element_type=jnp.float32)  # [TB, 128]

    @pl.when(c == pl.num_programs(1) - 1)
    def _():
        # model.fc bias + F.relu
        h = jnp.maximum(acc_ref[...] + bfc_ref[...], 0.0)
        # fc1 + relu
        h = jnp.dot(h, w1_ref[...], preferred_element_type=jnp.float32) + b1_ref[...]
        h = jnp.maximum(h, 0.0)
        # fc2 (no activation, matches forward())
        o_ref[...] = (jnp.dot(h, w2_ref[...], preferred_element_type=jnp.float32)
                      + b2_ref[...]).astype(o_ref.dtype)


def basenet3_head_channels_last(x_blc, params, *, tile_b=None, c_chunk=512):
    """x_blc: [B, HW, C=2048] channels-last (flattened-spatial) layer4 features.

    f32 or bf16 input; all accumulation is f32.
    """
    B, HW, C = x_blc.shape
    assert C == FEAT_C
    assert C % c_chunk == 0 and c_chunk % 128 == 0

    wfc, bfc, w1, b1, w2, b2 = params
    # Fold the 1/HW pooling scale into the first fc weight; kernel does a sum.
    wfc = (wfc * (1.0 / HW)).astype(jnp.float32)

    itemsize = jnp.dtype(x_blc.dtype).itemsize
    sublane = 16 if itemsize == 2 else 8
    hw_pad = _round_up(HW, sublane)                 # sublane-padded HW

    # --- padded-aware VMEM accounting + generation-aware tile_b selection ---
    cap = _vmem_capacity_bytes()
    budget = min(int(cap * 3 // 4), 100 << 20)      # ~48 MiB on v7x, ~96-100 MiB on v5e/v6e

    small_w_bytes = int(bfc.size + w1.size + b1.size + w2.size + b2.size) * 4
    wfc_block_bytes = c_chunk * 128 * 4

    def footprint(tb):
        x_blk = tb * hw_pad * c_chunk * itemsize    # streamed input block
        out_blk = tb * 128 * 4                      # 32 lanes pad to 128
        acc = tb * 128 * 4                          # accumulator scratch
        # 2x for double buffering of everything pipelined + headroom.
        return 2 * (x_blk + wfc_block_bytes + small_w_bytes + out_blk) + acc + (4 << 20)

    if tile_b is None:
        tb = min(_round_up(B, 8), 256)
        while tb > 8 and footprint(tb) > budget:
            tb -= 8
        tile_b = tb
    assert tile_b % 8 == 0

    b_pad = _round_up(B, tile_b)
    x = x_blc
    if b_pad != B:
        x = jnp.pad(x, ((0, b_pad - B), (0, 0), (0, 0)))

    grid = (b_pad // tile_b, C // c_chunk)
    vmem_limit = int(min(max(footprint(tile_b), 32 << 20), int(cap * 0.9)))

    w_bytes = int(wfc.size) * 4 + small_w_bytes
    cost = pl.CostEstimate(
        flops=int(b_pad * (HW * C + 2 * C * 128 + 2 * 128 * 64 + 2 * 64 * 32)),
        transcendentals=0,
        bytes_accessed=int(b_pad * HW * C * itemsize + w_bytes + b_pad * 32 * 4),
    )

    out = pl.pallas_call(
        _basenet3_head_kernel,
        out_shape=jax.ShapeDtypeStruct((b_pad, 32), jnp.float32),
        grid=grid,
        in_specs=[
            # streamed feature tile: [TB, HW, Cc]
            pl.BlockSpec((tile_b, HW, c_chunk), lambda i, c: (i, 0, c)),
            # Wfc is chunked along C with the grid's reduction axis.
            pl.BlockSpec((c_chunk, 128), lambda i, c: (c, 0)),
            # Small weights/biases: constant block index -> DMA'd once, VMEM-resident.
            pl.BlockSpec(bfc.shape, lambda i, c: (0, 0)),
            pl.BlockSpec(w1.shape, lambda i, c: (0, 0)),
            pl.BlockSpec(b1.shape, lambda i, c: (0, 0)),
            pl.BlockSpec(w2.shape, lambda i, c: (0, 0)),
            pl.BlockSpec(b2.shape, lambda i, c: (0, 0)),
        ],
        out_specs=pl.BlockSpec((tile_b, 32), lambda i, c: (i, 0)),
        scratch_shapes=[pltpu.VMEM((tile_b, 128), jnp.float32)],
        compiler_params=pltpu.CompilerParams(
            dimension_semantics=("parallel", "arbitrary"),
            vmem_limit_bytes=vmem_limit,
        ),
        cost_estimate=cost,
    )(x, wfc, bfc, w1, b1, w2, b2)

    return out[:B]


def basenet3_head(x_nchw, params, **kw):
    """x_nchw: [B, 2048, H, W] resnet152 layer4 features (PyTorch NCHW layout)."""
    B, C, H, W = x_nchw.shape
    assert C == FEAT_C
    # One XLA transpose to channels-last; if the frozen trunk emits NHWC this
    # becomes a pure reshape (preferred).
    x = jnp.transpose(x_nchw.reshape(B, C, H * W), (0, 2, 1))   # [B, HW, C]
    return basenet3_head_channels_last(x, params, **kw)


def init_params(key):
    """Deterministic PyTorch-style (uniform +-1/sqrt(fan_in)) Linear init.

    Weights are stored transposed ([in, out]) so the kernel computes x @ W,
    matching PyTorch's x @ W.T with W of shape [out, in].
    """
    def linear(k, fan_in, fan_out):
        kw, kb = jax.random.split(k)
        bound = 1.0 / (fan_in ** 0.5)
        w = jax.random.uniform(kw, (fan_out, fan_in), jnp.float32, -bound, bound)
        b = jax.random.uniform(kb, (fan_out,), jnp.float32, -bound, bound)
        return w.T, b.reshape(1, fan_out)

    k1, k2, k3 = jax.random.split(key, 3)
    wfc, bfc = linear(k1, FEAT_C, 128)   # replaced model.fc
    w1, b1 = linear(k2, 128, 64)         # self.fc1
    w2, b2 = linear(k3, 64, 32)          # self.fc2
    return wfc, bfc, w1, b1, w2, b2


def _reference(x_nchw, params):
    wfc, bfc, w1, b1, w2, b2 = params
    pooled = jnp.mean(x_nchw.astype(jnp.float32), axis=(2, 3))   # [B, 2048]
    h = jnp.maximum(pooled @ wfc + bfc, 0.0)
    h = jnp.maximum(h @ w1 + b1, 0.0)
    return h @ w2 + b2


if __name__ == "__main__":
    key = jax.random.PRNGKey(0)
    k_x, k_p = jax.random.split(key)

    # Small, shape-consistent stand-in for the resnet152 layer4 output:
    # [B=2, C=2048, H=4, W=4] (real resnet152 @224 input gives H=W=7).
    x = jax.random.normal(k_x, (2, FEAT_C, 4, 4), dtype=jnp.float32)
    params = init_params(k_p)

    out = basenet3_head(x, params)
    out = jax.block_until_ready(out)

    ref = _reference(x, params)
    assert out.shape == (2, 32), out.shape
    assert jnp.allclose(out, ref, atol=1e-3, rtol=1e-3), "mismatch vs reference"

    print("KERNEL_OK")
</pallas_src>

<mosaic_0001>
module attributes {stable_mosaic.version = 11 : i64} {
  func.func @_basenet3_head_kernel(%arg0: i32, %arg1: i32, %arg2: memref<8x16x512xf32, #tpu.memory_space<vmem>>, %arg3: memref<512x128xf32, #tpu.memory_space<vmem>>, %arg4: memref<1x128xf32, #tpu.memory_space<vmem>>, %arg5: memref<128x64xf32, #tpu.memory_space<vmem>>, %arg6: memref<1x64xf32, #tpu.memory_space<vmem>>, %arg7: memref<64x32xf32, #tpu.memory_space<vmem>>, %arg8: memref<1x32xf32, #tpu.memory_space<vmem>>, %arg9: memref<8x32xf32, #tpu.memory_space<vmem>>, %arg10: memref<8x128xf32, #tpu.memory_space<vmem>>) attributes {dimension_semantics = [#tpu.dimension_semantics<parallel>, #tpu.dimension_semantics<arbitrary>], iteration_bounds = array<i64: 1, 4>, scalar_prefetch = 0 : i64, scratch_operands = 1 : i64, tpu.core_type = #tpu.core_type<tc>, window_params = [{transform_indices = @transform_0, window_bounds = array<i64: 8, 16, 512>}, {transform_indices = @transform_1, window_bounds = array<i64: 512, 128>}, {pipeline_mode = #tpu.pipeline_mode<synchronous>, transform_indices = @transform_2, window_bounds = array<i64: 1, 128>}, {pipeline_mode = #tpu.pipeline_mode<synchronous>, transform_indices = @transform_3, window_bounds = array<i64: 128, 64>}, {pipeline_mode = #tpu.pipeline_mode<synchronous>, transform_indices = @transform_4, window_bounds = array<i64: 1, 64>}, {pipeline_mode = #tpu.pipeline_mode<synchronous>, transform_indices = @transform_5, window_bounds = array<i64: 64, 32>}, {pipeline_mode = #tpu.pipeline_mode<synchronous>, transform_indices = @transform_6, window_bounds = array<i64: 1, 32>}, {transform_indices = @transform_7, window_bounds = array<i64: 8, 32>}]} {
    %c0_i32 = arith.constant 0 : i32
    %0 = arith.cmpi eq, %arg1, %c0_i32 : i32
    %1 = arith.extui %0 : i1 to i32
    %c0_i32_0 = arith.constant 0 : i32
    %2 = arith.cmpi ne, %1, %c0_i32_0 : i32
    scf.if %2 {
      %cst_11 = arith.constant 0.000000e+00 : f32
      %13 = vector.broadcast %cst_11 : f32 to vector<8x128xf32>
      %c0_12 = arith.constant 0 : index
      %c0_13 = arith.constant 0 : index
      %14 = vector.load %arg10[%c0_12, %c0_13] : memref<8x128xf32, #tpu.memory_space<vmem>>, vector<8x128xf32>
      tpu.vector_store %arg10[%c0_12, %c0_13], %13 {strides = array<i32>} : memref<8x128xf32, #tpu.memory_space<vmem>>, vector<8x128xf32>,
    } else {
    }
    %c0 = arith.constant 0 : index
    %c0_1 = arith.constant 0 : index
    %c0_2 = arith.constant 0 : index
    %3 = vector.load %arg2[%c0, %c0_1, %c0_2] : memref<8x16x512xf32, #tpu.memory_space<vmem>>, vector<8x16x512xf32>
    %cst = arith.constant dense<0.000000e+00> : vector<8x512xf32>
    %4 = vector.multi_reduction <add>, %3, %cst [1] : vector<8x16x512xf32> to vector<8x512xf32>
    %c0_3 = arith.constant 0 : index
    %c0_4 = arith.constant 0 : index
    %5 = vector.load %arg10[%c0_3, %c0_4] : memref<8x128xf32, #tpu.memory_space<vmem>>, vector<8x128xf32>
    %c0_5 = arith.constant 0 : index
    %c0_6 = arith.constant 0 : index
    %6 = vector.load %arg3[%c0_5, %c0_6] : memref<512x128xf32, #tpu.memory_space<vmem>>, vector<512x128xf32>
    %cst_7 = arith.constant dense<0.000000e+00> : vector<8x128xf32>
    %7 = tpu.matmul %4, %6, %cst_7 {dimension_numbers = #tpu.dot_dimension_numbers<[1], [0], [0], [1], [0, 0, 1, 1], [], []>} : vector<8x512xf32>, vector<512x128xf32>, vector<8x128xf32> -> vector<8x128xf32>
    %8 = arith.addf %5, %7 : vector<8x128xf32>
    %c0_8 = arith.constant 0 : index
    %c0_9 = arith.constant 0 : index
    %9 = vector.load %arg10[%c0_8, %c0_9] : memref<8x128xf32, #tpu.memory_space<vmem>>, vector<8x128xf32>
    tpu.vector_store %arg10[%c0_8, %c0_9], %8 {strides = array<i32>} : memref<8x128xf32, #tpu.memory_space<vmem>>, vector<8x128xf32>,
    %c3_i32 = arith.constant 3 : i32
    %10 = arith.cmpi eq, %arg1, %c3_i32 : i32
    %11 = arith.extui %10 : i1 to i32
    %c0_i32_10 = arith.constant 0 : i32
    %12 = arith.cmpi ne, %11, %c0_i32_10 : i32
    scf.if %12 {
      %c0_11 = arith.constant 0 : index
      %c0_12 = arith.constant 0 : index
      %13 = vector.load %arg10[%c0_11, %c0_12] : memref<8x128xf32, #tpu.memory_space<vmem>>, vector<8x128xf32>
      %c0_13 = arith.constant 0 : index
      %c0_14 = arith.constant 0 : index
      %14 = vector.load %arg4[%c0_13, %c0_14] : memref<1x128xf32, #tpu.memory_space<vmem>>, vector<1x128xf32>
      %15 = vector.broadcast %14 : vector<1x128xf32> to vector<8x128xf32>
      %16 = arith.addf %13, %15 : vector<8x128xf32>
      %cst_15 = arith.constant 0.000000e+00 : f32
      %17 = vector.broadcast %cst_15 : f32 to vector<8x128xf32>
      %18 = arith.maximumf %16, %17 : vector<8x128xf32>
      %c0_16 = arith.constant 0 : index
      %c0_17 = arith.constant 0 : index
      %19 = vector.load %arg5[%c0_16, %c0_17] : memref<128x64xf32, #tpu.memory_space<vmem>>, vector<128x64xf32>
      %cst_18 = arith.constant dense<0.000000e+00> : vector<8x64xf32>
      %20 = tpu.matmul %18, %19, %cst_18 {dimension_numbers = #tpu.dot_dimension_numbers<[1], [0], [0], [1], [0, 0, 1, 1], [], []>} : vector<8x128xf32>, vector<128x64xf32>, vector<8x64xf32> -> vector<8x64xf32>
      %c0_19 = arith.constant 0 : index
      %c0_20 = arith.constant 0 : index
      %21 = vector.load %arg6[%c0_19, %c0_20] : memref<1x64xf32, #tpu.memory_space<vmem>>, vector<1x64xf32>
      %22 = vector.broadcast %21 : vector<1x64xf32> to vector<8x64xf32>
      %23 = arith.addf %20, %22 : vector<8x64xf32>
      %cst_21 = arith.constant 0.000000e+00 : f32
      %24 = vector.broadcast %cst_21 : f32 to vector<8x64xf32>
      %25 = arith.maximumf %23, %24 : vector<8x64xf32>
      %c0_22 = arith.constant 0 : index
      %c0_23 = arith.constant 0 : index
      %26 = vector.load %arg7[%c0_22, %c0_23] : memref<64x32xf32, #tpu.memory_space<vmem>>, vector<64x32xf32>
      %cst_24 = arith.constant dense<0.000000e+00> : vector<8x32xf32>
      %27 = tpu.matmul %25, %26, %cst_24 {dimension_numbers = #tpu.dot_dimension_numbers<[1], [0], [0], [1], [0, 0, 1, 1], [], []>} : vector<8x64xf32>, vector<64x32xf32>, vector<8x32xf32> -> vector<8x32xf32>
      %c0_25 = arith.constant 0 : index
      %c0_26 = arith.constant 0 : index
      %28 = vector.load %arg8[%c0_25, %c0_26] : memref<1x32xf32, #tpu.memory_space<vmem>>, vector<1x32xf32>
      %29 = vector.broadcast %28 : vector<1x32xf32> to vector<8x32xf32>
      %30 = arith.addf %27, %29 : vector<8x32xf32>
      %c0_27 = arith.constant 0 : index
      %c0_28 = arith.constant 0 : index
      %31 = vector.load %arg9[%c0_27, %c0_28] : memref<8x32xf32, #tpu.memory_space<vmem>>, vector<8x32xf32>
      tpu.vector_store %arg9[%c0_27, %c0_28], %30 {strides = array<i32>} : memref<8x32xf32, #tpu.memory_space<vmem>>, vector<8x32xf32>,
    } else {
    }
    return
  }
  func.func @transform_0(%arg0: i32, %arg1: i32) -> (i32, i32, i32) {
    %c0_i32 = arith.constant 0 : i32
    %c0_i32_0 = arith.constant 0 : i32
    return %arg0, %c0_i32, %arg1 : i32, i32, i32
  }
  func.func @transform_1(%arg0: i32, %arg1: i32) -> (i32, i32) {
    %c0_i32 = arith.constant 0 : i32
    %c0_i32_0 = arith.constant 0 : i32
    return %arg1, %c0_i32 : i32, i32
  }
  func.func @transform_2(%arg0: i32, %arg1: i32) -> (i32, i32) {
    %c0_i32 = arith.constant 0 : i32
    %c0_i32_0 = arith.constant 0 : i32
    %c0_i32_1 = arith.constant 0 : i32
    return %c0_i32, %c0_i32_0 : i32, i32
  }
  func.func @transform_3(%arg0: i32, %arg1: i32) -> (i32, i32) {
    %c0_i32 = arith.constant 0 : i32
    %c0_i32_0 = arith.constant 0 : i32
    %c0_i32_1 = arith.constant 0 : i32
    return %c0_i32, %c0_i32_0 : i32, i32
  }
  func.func @transform_4(%arg0: i32, %arg1: i32) -> (i32, i32) {
    %c0_i32 = arith.constant 0 : i32
    %c0_i32_0 = arith.constant 0 : i32
    %c0_i32_1 = arith.constant 0 : i32
    return %c0_i32, %c0_i32_0 : i32, i32
  }
  func.func @transform_5(%arg0: i32, %arg1: i32) -> (i32, i32) {
    %c0_i32 = arith.constant 0 : i32
    %c0_i32_0 = arith.constant 0 : i32
    %c0_i32_1 = arith.constant 0 : i32
    return %c0_i32, %c0_i32_0 : i32, i32
  }
  func.func @transform_6(%arg0: i32, %arg1: i32) -> (i32, i32) {
    %c0_i32 = arith.constant 0 : i32
    %c0_i32_0 = arith.constant 0 : i32
    %c0_i32_1 = arith.constant 0 : i32
    return %c0_i32, %c0_i32_0 : i32, i32
  }
  func.func @transform_7(%arg0: i32, %arg1: i32) -> (i32, i32) {
    %c0_i32 = arith.constant 0 : i32
    %c0_i32_0 = arith.constant 0 : i32
    return %arg0, %c0_i32 : i32, i32
  }
}

</mosaic_0001>

<bundles_post_ra>
// kernel: tpu_custom_call.1
= control target key start
LH: loop header
LB: loop body
LE: loop exit
PB: predicated region body
PF: predicated region fallthrough
CT: control target
= control target key end

     0   :  { %s2242_s0 = inlined_call_operand.hbm [shape: f32[8,16,2048], index: 0, kind: input, shape index: {}]   ;;  %s2243_s1 = inlined_call_operand.hbm [shape: f32[2048,128], index: 1, kind: input, shape index: {}]   ;;  %s2244_s2 = inlined_call_operand.vmem [shape: f32[1,128], index: 2, kind: input, shape index: {}]   ;;  %s2245_s3 = inlined_call_operand.vmem [shape: f32[128,64], index: 3, kind: input, shape index: {}]   ;;  %s2246_s4 = inlined_call_operand.vmem [shape: f32[1,64], index: 4, kind: input, shape index: {}]   ;;  %s2247_s5 = inlined_call_operand.vmem [shape: f32[64,32], index: 5, kind: input, shape index: {}]   ;;  %s2248_s6 = inlined_call_operand.vmem [shape: f32[1,32], index: 6, kind: input, shape index: {}]   ;;  %s2249_s7 = inlined_call_operand.hbm [shape: f32[8,32], index: 7, kind: output, shape index: {}]  }
   0x1   :  { %2252 = sst [smem:[#allocation12_spill]] %s2242_s0 }
   0x2   :  { %12 = vsyncpa [#allocation4], 0 }
   0x3   :  { %14 = vsyncpa [#allocation4 + $0x1], 0 }
   0x4   :  { %15 = vsyncpa [#allocation7], 0 }
   0x5   :  { %17 = vsyncpa [#allocation7 + $0x1], 0 }
   0x6   :  { %18 = vsyncpa [#allocation5], 0  ;;  %s1764_s24 = smov 0   ;;  %s1766_s25 = smov 0  }
   0x7   :  { %s1768_s26 = smov 0   ;;  %s1770_s27 = smov 0  }
   0x8   :  { %s1772_s28 = smov 0   ;;  %s1774_s29 = smov 0  }
   0x9 LB: > { %s2250_s30 = sadd.s32 4294967295, %s1710_s29   ;;  %s33_s8 = sadd.s32 1, %s1706_s28  ;;  %s1710_s29 = sphi %s1774_s29, %s24_s29   ;;  %s1706_s28 = sphi %s1772_s28, %s2266_s28   ;;  %s1702_s27 = sphi %s1770_s27, %s2265_s27   ;;  %s1698_s26 = sphi %s1768_s26, %s2264_s26   ;;  %s1694_s25 = sphi %s1766_s25, %s2263_s25   ;;  %s1690_s24 = sphi %s1764_s24, %s2262_s24  }
   0xa   : > { %p34_p0 = scmp.ge.s32.totalorder %s33_s8, 4  ;;  %s45_s9 = sadd.s32 1, %s1698_s26 }
   0xb   : > { %p52_p1 = scmp.ne.s32.totalorder %s1698_s26, %s1694_s25  ;;  %p53_p2 = scmp.eq.s32.totalorder %s1710_s29, 0 }
   0xc   : > { %s2268_s8 = smov (%p34_p0, %s33_s8), 0  ;;  %p58_p4 = scmp.ne.s32.totalorder %s1694_s25, %s1690_s24 }
   0xd   : > { %p1800_p3 = por %p53_p2, %p52_p1  ;;  %s41_s11 = ssub.s32 %s1706_s28, %s2268_s8 }
   0xe   : > { %p59_p5 = scmp.eq.s32.totalorder %s2250_s30, 0  ;;  %p43_p6 = scmp.eq.s32.totalorder %s41_s11, 0 }
   0xf   : > { %p1505_p8 = scmp.lt.s32.totalorder %s1710_s29, 4  ;;  %s1818_s14 = sand.u32 1, %s1698_s26  }
  0x10   : > { %p1809_p7 = por %p59_p5, %p58_p4  ;;  %s1238_s15 = sshll.u32 %s1706_s28, 9 }
  0x11   : > { %s1815_s13 = scalar_select %p43_p6, %s1698_s26, %s45_s9  }
  0x12   : > { %s2254_s12 = scalar_select %p1809_p7, 1, 0 }
  0x13   : > { %s1219_s16 = sshll.u32 %s1818_s14, 9  ;;  %s2255_s0 = sld [smem:[#allocation12_spill]] }
  0x14   : > { %s258_s20 = scalar_lea.vmem [#allocation3], %s1219_s16  ;;  %p1831_p9 = pnand %p1505_p8, %p1800_p3 }
  0x15   : > { %s268_s21 = sshll.u32 %s258_s20, 4  ;;  %s255_s23 = scalar_lea.sflag [#allocation4], %s1818_s14  ;;  %s1835_s21 = int_to_ptr.vmem [resolvable:$true] %s268_s21 }
  0x16   : > { %p1568_p12 = pneg %p1831_p9 }
  0x19   : > { %s1825_s19 = scalar_lea.hbm %s2255_s0, %s1238_s15  ;;  %s1571_s11 = scalar_lea.hbm %s2255_s0, 32768 }
  0x1a   : > { %s1566_s24 = scalar_lea.hbm %s1825_s19, 8192  ;;  %p1572_p1 = scmp.lt.u32.totalorder %s1825_s19, %s2255_s0 }
  0x1b   : > { %p1567_p11 = scmp.ne.s32.totalorder %s1825_s19, %s1566_s24  ;;  %p1573_p2 = scmp.lt.u32.totalorder %s1571_s11, %s1566_s24 }
  0x1c   : > { %p1575_p4 = scmp.lt.u32.totalorder %s1566_s24, %s1825_s19 }
  0x1d   : > { %p1569_p13 = pnand %p1568_p12, %p1567_p11  ;;  %p1574_p3 = por %p1573_p2, %p1572_p1 }
  0x1f   : > { %p1570_p0 = pneg %p1569_p13  ;;  %p1576_p5 = por %p1575_p4, %p1574_p3 }
  0x21   : > { %p1577_p6 = pnand %p1576_p5, %p1570_p0 }
  0x23   : > { %1580 = shalt.err (!%p1577_p6)
}
  0x24   : > { %s1581_s18 = scalar_lea.vmem %s1835_s21, 8192  ;;  %s1712_s20 = smov [#allocation3]  }
  0x25   : > { %p1582_p8 = scmp.ne.s32.totalorder %s1835_s21, %s1581_s18  ;;  %s1586_s9 = sshll.u32 %s1712_s20, 4  ;;  %s1587_s9 = int_to_ptr.vmem [resolvable:$false] %s1586_s9 }
  0x26   : > { %s1588_s10 = scalar_lea.vmem %s1587_s9, 16384  ;;  %p1589_p10 = scmp.lt.s32.totalorder %s1835_s21, %s1587_s9 }
  0x27   : > { %p1584_p11 = pnand %p1582_p8, %p1568_p12  ;;  %p1590_p1 = scmp.lt.s32.totalorder %s1588_s10, %s1581_s18 }
  0x29   : > { %p1585_p13 = pneg %p1584_p11  ;;  %p1591_p2 = por %p1590_p1, %p1589_p10 }
  0x2b   : > { %p1592_p3 = pnand %p1591_p2, %p1585_p13 }
  0x2d   : > { %1595 = shalt.err (!%p1592_p3)
}
  0x2e   : > { %s1713_s24 = smov 2048   ;;  %s1714_s11 = smov 512  }
  0x2f   : > { %s1715_s15 = smov 32   ;;  %p297_p0 = scmp.lt.s32.totalorder %s1710_s29, 5 }
  0x30   : > { %1501 = dma.hbm_to_vmem [thread:$0]  (!%p1831_p9), %s1825_s19, 8192, %s1835_s21, %s255_s23, %s1713_s24, %s1714_s11, %s1715_s15  }
  0x31   : > { %s1239_s17 = sshll.u32 %s1706_s28, 13  ;;  %p2257_p10 = scmp.ge.s32.totalorder %s1710_s29, 1 }
  0x32   : > { %s1877_s10 = scalar_lea.hbm %s2243_s1, %s1239_s17  ;;  %s282_s30 = scalar_lea.vmem [#allocation6], %s1219_s16 }
  0x33   : > { %p1870_p4 = pnand %p2257_p10, %p297_p0  ;;  %s289_s0 = sshll.u32 %s282_s30, 4  ;;  %s1881_s0 = int_to_ptr.vmem [resolvable:$true] %s289_s0 }
  0x34   : > { %s279_s19 = scalar_lea.sflag [#allocation7], %s1818_s14  ;;  %s1596_s21 = scalar_lea.hbm %s1877_s10, 8192 }
  0x35   : > { %p1597_p5 = scmp.ne.s32.totalorder %s1877_s10, %s1596_s21  ;;  %s1601_s11 = scalar_lea.hbm %s2243_s1, 32768 }
  0x36   : > { %p1602_p11 = scmp.lt.u32.totalorder %s1877_s10, %s2243_s1  ;;  %p1603_p13 = scmp.lt.u32.totalorder %s1601_s11, %s1596_s21 }
  0x37   : > { %p1599_p6 = pnand %p1597_p5, %p1568_p12  ;;  %p1605_p2 = scmp.lt.u32.totalorder %s1596_s21, %s1877_s10 }
  0x38   : > { %p1604_p1 = por %p1603_p13, %p1602_p11 }
  0x39   : > { %p1600_p8 = pneg %p1599_p6 }
  0x3a   : > { %p1606_p3 = por %p1605_p2, %p1604_p1 }
  0x3c   : > { %p1607_p0 = pnand %p1606_p3, %p1600_p8 }
  0x3e   : > { %1610 = shalt.err (!%p1607_p0)
}
  0x3f   : > { %s1611_s30 = scalar_lea.vmem %s1881_s0, 8192  ;;  %s1716_s16 = smov [#allocation6]  }
  0x40   : > { %p1612_p10 = scmp.ne.s32.totalorder %s1881_s0, %s1611_s30  ;;  %s1616_s20 = sshll.u32 %s1716_s16, 4  ;;  %s1617_s20 = int_to_ptr.vmem [resolvable:$false] %s1616_s20 }
  0x41   : > { %s1618_s9 = scalar_lea.vmem %s1617_s20, 16384  ;;  %p1619_p7 = scmp.lt.s32.totalorder %s1881_s0, %s1617_s20 }
  0x42   : > { %p1614_p5 = pnand %p1612_p10, %p1568_p12  ;;  %p1620_p11 = scmp.lt.s32.totalorder %s1618_s9, %s1611_s30 }
  0x44   : > { %p1615_p6 = pneg %p1614_p5  ;;  %p1621_p13 = por %p1620_p11, %p1619_p7 }
  0x46   : > { %p1622_p1 = pnand %p1621_p13, %p1615_p6 }
  0x48   : > { %1625 = shalt.err (!%p1622_p1)
}
  0x49   : > { %s1717_s21 = smov 128   ;;  %s1718_s23 = smov 8  }
  0x4a   : > { %1504 = dma.hbm_to_vmem [thread:$0]  (!%p1831_p9), %s1877_s10, 8192, %s1881_s0, %s279_s19, %s1717_s21, %s1717_s21, %s1718_s23  }
  0x4b   : > { %301 = sbr.rel (%p1870_p4) target bundleno = 877 (0x36d), region = 48  ;;  %s303_s24 = sand.u32 (!%p1870_p4), 1, %s1694_s25  }
  0x4c   : > { %s1226_s11 = sshll.u32 (!%p1870_p4), %s303_s24, 9  ;;  %s304_s15 = scalar_lea.sflag (!%p1870_p4), [#allocation4], %s303_s24 }
  0x4d   : > { %s1912_s17 = scalar_lea.vmem (!%p1870_p4), [#allocation3], %s1226_s11  ;;  %p2259_p7 = scmp.ne.s32.totalorder (!%p1870_p4), %s2254_s12, 0 }
  0x52   : > { %1677 = dma.done.wait (%p2259_p7), %s304_s15, 8192  }
  0x53   : > { %1679 = vsyncadd (%p2259_p7), %s304_s15, 4294959104  ;;  %s313_s30 = scalar_lea.sflag [#allocation7], %s303_s24  ;;  %s1918_s22 = scalar_lea.vmem [#allocation6], %s1226_s11 }
  0x54   : > { %1681 = dma.done.wait (%p2259_p7), %s313_s30, 8192  }
  0x55   : > { %1683 = vsyncadd (%p2259_p7), %s313_s30, 4294959104  ;;  %p1228_p9 = scmp.ne.s32.totalorder %s1702_s27, 0 }
  0x56   : > { %v1719_v0 = vmov (!%p1228_p9), 0.0  }
  0x57   : > { %353 = sbr.rel (%p1228_p9) target bundleno = 94 (0x5e), region = 60  ;;  %354 = vst [vmem:[#allocation2] sm:$0xff] (!%p1228_p9), %v1719_v0 }
  0x5e PF: > { %v660_v1 = vld [vmem:[%s1918_s22 + $0x80] sm:$0xff]  ;;  %v661_v2 = vld [vmem:[%s1918_s22 + $0x88] sm:$0xff]  ;;  %v662_v12 = vld [vmem:[%s1918_s22 + $0x90] sm:$0xff]  ;;  %vm740_vm0 = vcmask 1041409   ;;  %vm742_vm1 = vcmask 1042434   ;;  %vm744_vm2 = vcmask 1043459  }
  0x5f   : > { %v692_v3 = vld [vmem:[%s1918_s22 + $0x180] sm:$0xff]  ;;  %v1390_v4 = vpack.c.bf16 %v661_v2, %v660_v1  ;;  %v693_v5 = vld [vmem:[%s1918_s22 + $0x188] sm:$0xff]  ;;  %v663_v14 = vld [vmem:[%s1918_s22 + $0x98] sm:$0xff]  ;;  %vm746_vm3 = vcmask 1044484   ;;  %vm748_vm4 = vcmask 1045509   ;;  %vm750_vm5 = vcmask 1046534  }
  0x60   : > { %v644_v6 = vld [vmem:[%s1918_s22] sm:$0xff]  ;;  %v645_v7 = vld [vmem:[%s1918_s22 + $0x8] sm:$0xff]  ;;  %v1422_v8 = vpack.c.bf16 %v693_v5, %v692_v3  ;;  %v694_v15 = vld [vmem:[%s1918_s22 + $0x190] sm:$0xff]  ;;  %v1394_v17 = vpack.c.bf16 %v663_v14, %v662_v12  ;;  %vm752_vm6 = vcmask 1047559   ;;  %p1229_p12 = scmp.ne.s32.totalorder %s1702_s27, 3 }
  0x61   : > { %v1392_v9 = vpack.c.bf16 %v645_v7, %v644_v6  ;;  %v676_v10 = vld [vmem:[%s1918_s22 + $0x100] sm:$0xff]  ;;  %v677_v11 = vld [vmem:[%s1918_s22 + $0x108] sm:$0xff]  ;;  %1391 = vmatprep.subr.bf16.mxu0 %v1390_v4  ;;  %v695_v16 = vld [vmem:[%s1918_s22 + $0x198] sm:$0xff]  ;;  %vm1721_vm7 = vmmov (!%p1229_p12), 0   ;;  %vm1044_vm8 = vcmask (!%p1229_p12), 523264   ;;  %vm1118_vm9 = vcmask (!%p1229_p12), 261120  }
  0x62   : > { %v1424_v13 = vpack.c.bf16 %v677_v11, %v676_v10  ;;  %1423 = vmatprep.subr.bf16.mxu1 %v1422_v8  ;;  %v1426_v18 = vpack.c.bf16 %v695_v16, %v694_v15  ;;  %v646_v19 = vld [vmem:[%s1918_s22 + $0x10] sm:$0xff]  ;;  %v647_v20 = vld [vmem:[%s1918_s22 + $0x18] sm:$0xff]  ;;  %v664_v24 = vld [vmem:[%s1918_s22 + $0xa0] sm:$0xff] }
  0x63   : > { %1393 = vmatpush3.bf16.msra.mxu0 %v1392_v9  ;;  %v678_v21 = vld [vmem:[%s1918_s22 + $0x110] sm:$0xff]  ;;  %v1396_v22 = vpack.c.bf16 %v647_v20, %v646_v19  ;;  %v679_v23 = vld [vmem:[%s1918_s22 + $0x118] sm:$0xff]  ;;  %v665_v25 = vld [vmem:[%s1918_s22 + $0xa8] sm:$0xff] }
  0x64   : > { %1425 = vmatpush3.bf16.msra.mxu1 %v1424_v13  ;;  %1395 = vmatprep.subr.bf16.mxu0 %v1394_v17  ;;  %v1428_v26 = vpack.c.bf16 %v679_v23, %v678_v21  ;;  %v1398_v27 = vpack.c.bf16 %v665_v25, %v664_v24  ;;  %v696_v28 = vld [vmem:[%s1918_s22 + $0x1a0] sm:$0xff]  ;;  %v697_v29 = vld [vmem:[%s1918_s22 + $0x1a8] sm:$0xff]  ;;  %v666_v36 = vld [vmem:[%s1918_s22 + $0xb0] sm:$0xff] }
  0x65   : > { %1427 = vmatprep.subr.bf16.mxu1 %v1426_v18  ;;  %v648_v30 = vld [vmem:[%s1918_s22 + $0x20] sm:$0xff]  ;;  %v1430_v31 = vpack.c.bf16 %v697_v29, %v696_v28  ;;  %v649_v32 = vld [vmem:[%s1918_s22 + $0x28] sm:$0xff]  ;;  %v667_v37 = vld [vmem:[%s1918_s22 + $0xb8] sm:$0xff] }
  0x66   : > { %v680_v33 = vld [vmem:[%s1918_s22 + $0x120] sm:$0xff]  ;;  %v681_v34 = vld [vmem:[%s1918_s22 + $0x128] sm:$0xff]  ;;  %v1400_v35 = vpack.c.bf16 %v649_v32, %v648_v30  ;;  %v698_v38 = vld [vmem:[%s1918_s22 + $0x1b0] sm:$0xff]  ;;  %v1402_v40 = vpack.c.bf16 %v667_v37, %v666_v36 }
  0x67   : > { %1397 = vmatpush3.bf16.msra.mxu0 %v1396_v22  ;;  %v1432_v39 = vpack.c.bf16 %v681_v34, %v680_v33  ;;  %v699_v41 = vld [vmem:[%s1918_s22 + $0x1b8] sm:$0xff]  ;;  %v650_v42 = vld [vmem:[%s1918_s22 + $0x30] sm:$0xff]  ;;  %v668_v47 = vld [vmem:[%s1918_s22 + $0xc0] sm:$0xff] }
  0x68   : > { %1429 = vmatpush3.bf16.msra.mxu1 %v1428_v26  ;;  %1399 = vmatprep.subr.bf16.mxu0 %v1398_v27  ;;  %v651_v43 = vld [vmem:[%s1918_s22 + $0x38] sm:$0xff]  ;;  %v1434_v44 = vpack.c.bf16 %v699_v41, %v698_v38  ;;  %v682_v45 = vld [vmem:[%s1918_s22 + $0x130] sm:$0xff]  ;;  %v669_v48 = vld [vmem:[%s1918_s22 + $0xc8] sm:$0xff] }
  0x69   : > { %1431 = vmatprep.subr.bf16.mxu1 %v1430_v31  ;;  %v683_v46 = vld [vmem:[%s1918_s22 + $0x138] sm:$0xff]  ;;  %v700_v49 = vld [vmem:[%s1918_s22 + $0x1c0] sm:$0xff]  ;;  %v701_v50 = vld [vmem:[%s1918_s22 + $0x1c8] sm:$0xff]  ;;  %v1404_v51 = vpack.c.bf16 %v651_v43, %v650_v42  ;;  %v1406_v54 = vpack.c.bf16 %v669_v48, %v668_v47 }
  0x6a   : > { %v652_v52 = vld [vmem:[%s1918_s22 + $0x40] sm:$0xff]  ;;  %v1436_v53 = vpack.c.bf16 %v683_v46, %v682_v45  ;;  %v653_v55 = vld [vmem:[%s1918_s22 + $0x48] sm:$0xff]  ;;  %v1438_v58 = vpack.c.bf16 %v701_v50, %v700_v49  ;;  %v670_v59 = vld [vmem:[%s1918_s22 + $0xd0] sm:$0xff] }
  0x6b   : > { %1401 = vmatpush3.bf16.msra.mxu0 %v1400_v35  ;;  %v684_v56 = vld [vmem:[%s1918_s22 + $0x140] sm:$0xff]  ;;  %v685_v57 = vld [vmem:[%s1918_s22 + $0x148] sm:$0xff]  ;;  %v671_v60 = vld [vmem:[%s1918_s22 + $0xd8] sm:$0xff]  ;;  %v1408_v1 = vpack.c.bf16 %v653_v55, %v652_v52 }
  0x6c   : > { %1433 = vmatpush3.bf16.msra.mxu1 %v1432_v39  ;;  %1403 = vmatprep.subr.bf16.mxu0 %v1402_v40  ;;  %v702_v61 = vld [vmem:[%s1918_s22 + $0x1d0] sm:$0xff]  ;;  %v703_v62 = vld [vmem:[%s1918_s22 + $0x1d8] sm:$0xff]  ;;  %v672_v4 = vld [vmem:[%s1918_s22 + $0xe0] sm:$0xff]  ;;  %v1440_v5 = vpack.c.bf16 %v685_v57, %v684_v56  ;;  %v1410_v6 = vpack.c.bf16 %v671_v60, %v670_v59 }
  0x6d   : > { %1435 = vmatprep.subr.bf16.mxu1 %v1434_v44  ;;  %v654_v63 = vld [vmem:[%s1918_s22 + $0x50] sm:$0xff]  ;;  %v655_v0 = vld [vmem:[%s1918_s22 + $0x58] sm:$0xff]  ;;  %v673_v7 = vld [vmem:[%s1918_s22 + $0xe8] sm:$0xff]  ;;  %v1442_v10 = vpack.c.bf16 %v703_v62, %v702_v61 }
  0x6e   : > { %v686_v2 = vld [vmem:[%s1918_s22 + $0x150] sm:$0xff]  ;;  %v687_v3 = vld [vmem:[%s1918_s22 + $0x158] sm:$0xff]  ;;  %v704_v8 = vld [vmem:[%s1918_s22 + $0x1e0] sm:$0xff]  ;;  %v1412_v19 = vpack.c.bf16 %v655_v0, %v654_v63  ;;  %v1414_v24 = vpack.c.bf16 %v673_v7, %v672_v4 }
  0x6f   : > { %1405 = vmatpush3.bf16.msra.mxu0 %v1404_v51  ;;  %v705_v9 = vld [vmem:[%s1918_s22 + $0x1e8] sm:$0xff]  ;;  %v1978_v11 = vld [vmem:[%s1918_s22 + $0x60] sm:$0xff]  ;;  %v1988_v15 = vld [vmem:[%s1918_s22 + $0xf0] sm:$0xff]  ;;  %v1444_v23 = vpack.c.bf16 %v687_v3, %v686_v2 }
  0x70   : > { %1437 = vmatpush3.bf16.msra.mxu1 %v1436_v53  ;;  %1407 = vmatprep.subr.bf16.mxu0 %v1406_v54  ;;  %v657_v12 = vld [vmem:[%s1918_s22 + $0x68] sm:$0xff]  ;;  %v1982_v13 = vld [vmem:[%s1918_s22 + $0x160] sm:$0xff]  ;;  %v1991_v16 = vld [vmem:[%s1918_s22 + $0xf8] sm:$0xff]  ;;  %v1446_v28 = vpack.c.bf16 %v705_v9, %v704_v8 }
  0x71   : > { %1439 = vmatprep.subr.bf16.mxu1 %v1438_v58  ;;  %v1985_v14 = vld [vmem:[%s1918_s22 + $0x168] sm:$0xff]  ;;  %v1994_v17 = vld [vmem:[%s1918_s22 + $0x1f0] sm:$0xff]  ;;  %v1997_v18 = vld [vmem:[%s1918_s22 + $0x1f8] sm:$0xff]  ;;  %v1416_v33 = vpack.c.bf16 %v657_v12, %v1978_v11  ;;  %v1418_v35 = vpack.c.bf16 %v1991_v16, %v1988_v15 }
  0x72   : > { %v2000_v20 = vld [vmem:[%s1918_s22 + $0x70] sm:$0xff]  ;;  %v2003_v21 = vld [vmem:[%s1918_s22 + $0x78] sm:$0xff]  ;;  %v356_v26 = vld [vmem:[%s1912_s17 + $0x8] sm:$0xff]  ;;  %v1448_v34 = vpack.c.bf16 %v1985_v14, %v1982_v13  ;;  %v1450_v40 = vpack.c.bf16 %v1997_v18, %v1994_v17 }
  0x73   : > { %1409 = vmatpush3.bf16.msra.mxu0 %v1408_v1  ;;  %v2006_v22 = vld [vmem:[%s1918_s22 + $0x170] sm:$0xff]  ;;  %v2009_v25 = vld [vmem:[%s1918_s22 + $0x178] sm:$0xff]  ;;  %v360_v27 = vld [vmem:[%s1912_s17 + $0x28] sm:$0xff]  ;;  %v1420_v47 = vpack.c.bf16 %v2003_v21, %v2000_v20 }
  0x74   : > { %1441 = vmatpush3.bf16.msra.mxu1 %v1440_v5  ;;  %1411 = vmatprep.subr.bf16.mxu0 %v1410_v6  ;;  %v364_v29 = vld [vmem:[%s1912_s17 + $0x48] sm:$0xff]  ;;  %v426_v32 = vadd.f32 %v360_v27, %v356_v26  ;;  %v1452_v48 = vpack.c.bf16 %v2009_v25, %v2006_v22  ;;  %v362_v25 = vld [vmem:[%s1912_s17 + $0x38] sm:$0xff] }
  0x75   : > { %1443 = vmatprep.subr.bf16.mxu1 %v1442_v10  ;;  %v368_v30 = vld [vmem:[%s1912_s17 + $0x68] sm:$0xff] }
  0x76   : > { %v372_v31 = vld [vmem:[%s1912_s17 + $0x88] sm:$0xff]  ;;  %v454_v39 = vadd.f32 %v368_v30, %v364_v29  ;;  %v427_v44 = vrot.slane %v426_v32, 4 }
  0x77   : > { %v376_v36 = vld [vmem:[%s1912_s17 + $0xa8] sm:$0xff]  ;;  %1413 = vmatpush3.bf16.msra.mxu0 %v1412_v19 }
  0x78   : > { %v380_v37 = vld [vmem:[%s1912_s17 + $0xc8] sm:$0xff]  ;;  %v482_v45 = vadd.f32 %v376_v36, %v372_v31  ;;  %1445 = vmatpush3.bf16.msra.mxu1 %v1444_v23  ;;  %1415 = vmatprep.subr.bf16.mxu0 %v1414_v24  ;;  %v455_v52 = vrot.slane %v454_v39, 4  ;;  %v428_v56 = vadd.f32 %v427_v44, %v426_v32  ;;  %v358_v24 = vld [vmem:[%s1912_s17 + $0x18] sm:$0xff] }
  0x79   : > { %v384_v38 = vld [vmem:[%s1912_s17 + $0xe8] sm:$0xff]  ;;  %1447 = vmatprep.subr.bf16.mxu1 %v1446_v28 }
  0x7a   : > { %v388_v41 = vld [vmem:[%s1912_s17 + $0x108] sm:$0xff]  ;;  %v510_v46 = vadd.f32 %v384_v38, %v380_v37  ;;  %v483_v57 = vrot.slane %v482_v45, 4  ;;  %v456_v60 = vadd.f32 %v455_v52, %v454_v39  ;;  %v429_v0 = vrot.slane %v428_v56, 2  ;;  %v374_v39 = vld [vmem:[%s1912_s17 + $0x98] sm:$0xff] }
  0x7b   : > { %v392_v42 = vld [vmem:[%s1912_s17 + $0x128] sm:$0xff]  ;;  %1417 = vmatpush3.bf16.msra.mxu0 %v1416_v33  ;;  %v398_v52 = vld [vmem:[%s1912_s17 + $0x158] sm:$0xff] }
  0x7c   : > { %v396_v43 = vld [vmem:[%s1912_s17 + $0x148] sm:$0xff]  ;;  %v538_v53 = vadd.f32 %v392_v42, %v388_v41  ;;  %v511_v58 = vrot.slane %v510_v46, 4  ;;  %v484_v1 = vadd.f32 %v483_v57, %v482_v45  ;;  %1449 = vmatpush3.bf16.msra.mxu1 %v1448_v34  ;;  %1419 = vmatprep.subr.bf16.mxu0 %v1418_v35  ;;  %v457_v4 = vrot.slane %v456_v60, 2  ;;  %v366_v34 = vld [vmem:[%s1912_s17 + $0x58] sm:$0xff] }
  0x7d   : > { %v400_v49 = vld [vmem:[%s1912_s17 + $0x168] sm:$0xff]  ;;  %1451 = vmatprep.subr.bf16.mxu1 %v1450_v40  ;;  %v430_v8 = vadd.f32 %v429_v0, %v428_v56  ;;  %v370_v35 = vld [vmem:[%s1912_s17 + $0x78] sm:$0xff]  ;;  %v440_v41 = vadd.f32 %v362_v25, %v358_v24 }
  0x7e   : > { %v404_v50 = vld [vmem:[%s1912_s17 + $0x188] sm:$0xff]  ;;  %v566_v59 = vadd.f32 %v400_v49, %v396_v43  ;;  %v539_v61 = vrot.slane %v538_v53, 4  ;;  %v512_v2 = vadd.f32 %v511_v58, %v510_v46  ;;  %v485_v9 = vrot.slane %v484_v1, 2  ;;  %v378_v40 = vld [vmem:[%s1912_s17 + $0xb8] sm:$0xff] }
  0x7f   : > { %v408_v51 = vld [vmem:[%s1912_s17 + $0x1a8] sm:$0xff]  ;;  %v458_v12 = vadd.f32 %v457_v4, %v456_v60  ;;  %1421 = vmatpush3.bf16.msra.mxu0 %v1420_v47  ;;  %v431_v16 = vrot.slane %v430_v8, 1  ;;  %v382_v46 = vld [vmem:[%s1912_s17 + $0xd8] sm:$0xff] }
  0x80   : > { %v412_v54 = vld [vmem:[%s1912_s17 + $0x1c8] sm:$0xff]  ;;  %v594_v62 = vadd.f32 %v408_v51, %v404_v50  ;;  %v567_v3 = vrot.slane %v566_v59, 4  ;;  %v540_v5 = vadd.f32 %v539_v61, %v538_v53  ;;  %v513_v10 = vrot.slane %v512_v2, 2  ;;  %1453 = vmatpush3.bf16.msra.mxu1 %v1452_v48  ;;  %v386_v47 = vld [vmem:[%s1912_s17 + $0xf8] sm:$0xff] }
  0x81   : > { %v416_v55 = vld [vmem:[%s1912_s17 + $0x1e8] sm:$0xff]  ;;  %v486_v17 = vadd.f32 %v485_v9, %v484_v1  ;;  %v459_v20 = vrot.slane %v458_v12, 1  ;;  %v432_v26 = vadd.f32 %v431_v16, %v430_v8  ;;  %v390_v48 = vld [vmem:[%s1912_s17 + $0x118] sm:$0xff] }
  0x82   : > { %v622_v63 = vadd.f32 %v416_v55, %v412_v54  ;;  %v595_v6 = vrot.slane %v594_v62, 4  ;;  %v568_v11 = vadd.f32 %v567_v3, %v566_v59  ;;  %v541_v13 = vrot.slane %v540_v5, 2  ;;  %v394_v51 = vld [vmem:[%s1912_s17 + $0x138] sm:$0xff] }
  0x83   : > { %v514_v18 = vadd.f32 %v513_v10, %v512_v2  ;;  %v487_v27 = vrot.slane %v486_v17, 1  ;;  %v460_v30 = vadd.f32 %v459_v20, %v458_v12  ;;  %v402_v53 = vld [vmem:[%s1912_s17 + $0x178] sm:$0xff]  ;;  %v441_v54 = vrot.slane %v440_v41, 4 }
  0x84   : > { %v623_v7 = vrot.slane %v622_v63, 4  ;;  %v596_v14 = vadd.f32 %v595_v6, %v594_v62  ;;  %v569_v19 = vrot.slane %v568_v11, 2  ;;  %v542_v21 = vadd.f32 %v541_v13, %v540_v5  ;;  %v406_v1 = vld [vmem:[%s1912_s17 + $0x198] sm:$0xff] }
  0x85   : > { %v515_v28 = vrot.slane %v514_v18, 1  ;;  %v488_v36 = vadd.f32 %v487_v27, %v486_v17  ;;  %v754_v45 = vsel %vm740_vm0, %v460_v30, %v432_v26  ;;  %v468_v55 = vadd.f32 %v370_v35, %v366_v34  ;;  %v410_v2 = vld [vmem:[%s1912_s17 + $0x1b8] sm:$0xff] }
  0x86   : > { %v624_v15 = vadd.f32 %v623_v7, %v622_v63  ;;  %v597_v22 = vrot.slane %v596_v14, 2  ;;  %v570_v29 = vadd.f32 %v569_v19, %v568_v11  ;;  %v543_v31 = vrot.slane %v542_v21, 1  ;;  %v414_v7 = vld [vmem:[%s1912_s17 + $0x1d8] sm:$0xff] }
  0x87   : > { %v516_v37 = vadd.f32 %v515_v28, %v514_v18  ;;  %v755_v50 = vsel %vm742_vm1, %v488_v36, %v754_v45  ;;  %v496_v59 = vadd.f32 %v378_v40, %v374_v39  ;;  %v442_v61 = vadd.f32 %v441_v54, %v440_v41  ;;  %v418_v8 = vld [vmem:[%s1912_s17 + $0x1f8] sm:$0xff] }
  0x88   : > { %v625_v23 = vrot.slane %v624_v15, 2  ;;  %v598_v32 = vadd.f32 %v597_v22, %v596_v14  ;;  %v571_v38 = vrot.slane %v570_v29, 1  ;;  %v544_v42 = vadd.f32 %v543_v31, %v542_v21 }
  0x89   : > { %v756_v58 = vsel %vm744_vm2, %v516_v37, %v755_v50  ;;  %v469_v62 = vrot.slane %v468_v55, 4  ;;  %v524_v63 = vadd.f32 %v386_v47, %v382_v46  ;;  %v497_v3 = vrot.slane %v496_v59, 4  ;;  %v363_v50 = vld [vmem:[%s1912_s17 + $0x40] sm:$0xff] }
  0x8a   : > { %v626_v33 = vadd.f32 %v625_v23, %v624_v15  ;;  %v599_v43 = vrot.slane %v598_v32, 1  ;;  %v572_v49 = vadd.f32 %v571_v38, %v570_v29  ;;  %v757_v60 = vsel %vm746_vm3, %v544_v42, %v756_v58  ;;  %v383_v58 = vld [vmem:[%s1912_s17 + $0xe0] sm:$0xff] }
  0x8b   : > { %v552_v4 = vadd.f32 %v394_v51, %v390_v48  ;;  %v580_v5 = vadd.f32 %v402_v53, %v398_v52  ;;  %v443_v9 = vrot.slane %v442_v61, 2  ;;  %v470_v10 = vadd.f32 %v469_v62, %v468_v55  ;;  %v367_v51 = vld [vmem:[%s1912_s17 + $0x60] sm:$0xff] }
  0x8c   : > { %v627_v44 = vrot.slane %v626_v33, 1  ;;  %v600_v56 = vadd.f32 %v599_v43, %v598_v32  ;;  %v758_v0 = vsel %vm748_vm4, %v572_v49, %v757_v60  ;;  %v525_v11 = vrot.slane %v524_v63, 4  ;;  %v355_v32 = vld [vmem:[%s1912_s17] sm:$0xff] }
  0x8d   : > { %v498_v13 = vadd.f32 %v497_v3, %v496_v59  ;;  %v553_v14 = vrot.slane %v552_v4, 4  ;;  %v581_v15 = vrot.slane %v580_v5, 4  ;;  %v444_v16 = vadd.f32 %v443_v9, %v442_v61  ;;  %v371_v52 = vld [vmem:[%s1912_s17 + $0x80] sm:$0xff] }
  0x8e   : > { %v628_v57 = vadd.f32 %v627_v44, %v626_v33  ;;  %v759_v6 = vsel %vm750_vm5, %v600_v56, %v758_v0  ;;  %v471_v17 = vrot.slane %v470_v10, 2  ;;  %v526_v18 = vadd.f32 %v525_v11, %v524_v63  ;;  %v359_v33 = vld [vmem:[%s1912_s17 + $0x20] sm:$0xff] }
  0x8f   : > { %v608_v19 = vadd.f32 %v410_v2, %v406_v1  ;;  %v499_v20 = vrot.slane %v498_v13, 2  ;;  %v554_v21 = vadd.f32 %v553_v14, %v552_v4  ;;  %v582_v22 = vadd.f32 %v581_v15, %v580_v5  ;;  %v375_v56 = vld [vmem:[%s1912_s17 + $0xa0] sm:$0xff] }
  0x90   : > { %v760_v12 = vsel %vm752_vm6, %v628_v57, %v759_v6  ;;  %v636_v23 = vadd.f32 %v418_v8, %v414_v7  ;;  %v445_v24 = vrot.slane %v444_v16, 1  ;;  %v472_v25 = vadd.f32 %v471_v17, %v470_v10  ;;  %v379_v57 = vld [vmem:[%s1912_s17 + $0xc0] sm:$0xff] }
  0x91   : > { %843 = vmatprep.mubr.f32.mxu0 %v760_v12  ;;  %v527_v26 = vrot.slane %v526_v18, 2  ;;  %v609_v27 = vrot.slane %v608_v19, 4  ;;  %v500_v28 = vadd.f32 %v499_v20, %v498_v13  ;;  %v555_v29 = vrot.slane %v554_v21, 2  ;;  %v387_v2 = vld [vmem:[%s1912_s17 + $0x100] sm:$0xff] }
  0x92   : > { %v583_v30 = vrot.slane %v582_v22, 2  ;;  %v637_v31 = vrot.slane %v636_v23, 4  ;;  %v446_v34 = vadd.f32 %v445_v24, %v444_v16  ;;  %v473_v35 = vrot.slane %v472_v25, 1  ;;  %v391_v3 = vld [vmem:[%s1912_s17 + $0x120] sm:$0xff] }
  0x93   : > { %v528_v36 = vadd.f32 %v527_v26, %v526_v18  ;;  %v610_v37 = vadd.f32 %v609_v27, %v608_v19  ;;  %v501_v38 = vrot.slane %v500_v28, 1  ;;  %v556_v39 = vadd.f32 %v555_v29, %v554_v21  ;;  %v395_v8 = vld [vmem:[%s1912_s17 + $0x140] sm:$0xff] }
  0x94   : > { %v584_v40 = vadd.f32 %v583_v30, %v582_v22  ;;  %v638_v41 = vadd.f32 %v637_v31, %v636_v23  ;;  %v474_v42 = vadd.f32 %v473_v35, %v472_v25  ;;  %v419_v45 = vadd.f32 %v359_v33, %v355_v32  ;;  %v399_v9 = vld [vmem:[%s1912_s17 + $0x160] sm:$0xff] }
  0x95   : > { %v529_v43 = vrot.slane %v528_v36, 1  ;;  %v611_v44 = vrot.slane %v610_v37, 2  ;;  %v502_v46 = vadd.f32 %v501_v38, %v500_v28  ;;  %v557_v47 = vrot.slane %v556_v39, 1  ;;  %v403_v17 = vld [vmem:[%s1912_s17 + $0x180] sm:$0xff] }
  0x96   : > { %v585_v48 = vrot.slane %v584_v40, 1  ;;  %v639_v49 = vrot.slane %v638_v41, 2  ;;  %v768_v55 = vsel %vm740_vm0, %v474_v42, %v446_v34  ;;  %v420_v59 = vrot.slane %v419_v45, 4  ;;  %v407_v18 = vld [vmem:[%s1912_s17 + $0x1a0] sm:$0xff] }
  0x97   : > { %v530_v53 = vadd.f32 %v529_v43, %v528_v36  ;;  %v612_v54 = vadd.f32 %v611_v44, %v610_v37  ;;  %v558_v60 = vadd.f32 %v557_v47, %v556_v39  ;;  %v769_v63 = vsel %vm742_vm1, %v502_v46, %v768_v55  ;;  %v411_v23 = vld [vmem:[%s1912_s17 + $0x1c0] sm:$0xff] }
  0x98   : > { %v586_v61 = vadd.f32 %v585_v48, %v584_v40  ;;  %v640_v62 = vadd.f32 %v639_v49, %v638_v41  ;;  %v421_v4 = vadd.f32 %v420_v59, %v419_v45  ;;  %v447_v5 = vadd.f32 %v367_v51, %v363_v50  ;;  %v415_v24 = vld [vmem:[%s1912_s17 + $0x1e0] sm:$0xff]  ;;  %v357_v40 = vld [vmem:[%s1912_s17 + $0x10] sm:$0xff] }
  0x99   : > { %v613_v0 = vrot.slane %v612_v54, 1  ;;  %v770_v1 = vsel %vm744_vm2, %v530_v53, %v769_v63  ;;  %v475_v10 = vadd.f32 %v375_v56, %v371_v52  ;;  %v503_v11 = vadd.f32 %v383_v58, %v379_v57  ;;  %v361_v41 = vld [vmem:[%s1912_s17 + $0x30] sm:$0xff] }
  0x9a   : > { %v641_v6 = vrot.slane %v640_v62, 1  ;;  %v771_v7 = vsel %vm746_vm3, %v558_v60, %v770_v1  ;;  %v422_v14 = vrot.slane %v421_v4, 2  ;;  %v448_v15 = vrot.slane %v447_v5, 4 }
  0x9b   : > { %v614_v12 = vadd.f32 %v613_v0, %v612_v54  ;;  %v772_v13 = vsel %vm748_vm4, %v586_v61, %v771_v7  ;;  %v476_v19 = vrot.slane %v475_v10, 4  ;;  %v504_v20 = vrot.slane %v503_v11, 4  ;;  %v365_v61 = vld [vmem:[%s1912_s17 + $0x50] sm:$0xff] }
  0x9c   : > { %v642_v16 = vadd.f32 %v641_v6, %v640_v62  ;;  %v531_v21 = vadd.f32 %v391_v3, %v387_v2  ;;  %v423_v25 = vadd.f32 %v422_v14, %v421_v4  ;;  %v449_v26 = vadd.f32 %v448_v15, %v447_v5  ;;  %v369_v62 = vld [vmem:[%s1912_s17 + $0x70] sm:$0xff] }
  0x9d   : > { %v773_v22 = vsel %vm750_vm5, %v614_v12, %v772_v13  ;;  %v559_v27 = vadd.f32 %v399_v9, %v395_v8  ;;  %v477_v29 = vadd.f32 %v476_v19, %v475_v10  ;;  %v505_v30 = vadd.f32 %v504_v20, %v503_v11  ;;  %v373_v7 = vld [vmem:[%s1912_s17 + $0x90] sm:$0xff] }
  0x9e   : > { %v774_v28 = vsel %vm752_vm6, %v642_v16, %v773_v22  ;;  %v532_v31 = vrot.slane %v531_v21, 4  ;;  %v424_v32 = vrot.slane %v423_v25, 1  ;;  %v450_v33 = vrot.slane %v449_v26, 2  ;;  %v377_v8 = vld [vmem:[%s1912_s17 + $0xb0] sm:$0xff] }
  0x9f   : > { %913 = vmatprep.mubr.f32.mxu1 %v774_v28  ;;  %v560_v34 = vrot.slane %v559_v27, 4  ;;  %v587_v35 = vadd.f32 %v407_v18, %v403_v17  ;;  %v478_v36 = vrot.slane %v477_v29, 2  ;;  %v506_v37 = vrot.slane %v505_v30, 2  ;;  %v381_v13 = vld [vmem:[%s1912_s17 + $0xd0] sm:$0xff] }
  0xa0   : > { %v533_v38 = vadd.f32 %v532_v31, %v531_v21  ;;  %v615_v39 = vadd.f32 %v415_v24, %v411_v23  ;;  %v425_v42 = vadd.f32 %v424_v32, %v423_v25  ;;  %v451_v43 = vadd.f32 %v450_v33, %v449_v26  ;;  %v385_v14 = vld [vmem:[%s1912_s17 + $0xf0] sm:$0xff] }
  0xa1   : > { %v561_v44 = vadd.f32 %v560_v34, %v559_v27  ;;  %v588_v45 = vrot.slane %v587_v35, 4  ;;  %v479_v46 = vadd.f32 %v478_v36, %v477_v29  ;;  %v507_v47 = vadd.f32 %v506_v37, %v505_v30  ;;  %v389_v19 = vld [vmem:[%s1912_s17 + $0x110] sm:$0xff] }
  0xa2   : > { %v534_v48 = vrot.slane %v533_v38, 2  ;;  %v616_v49 = vrot.slane %v615_v39, 4  ;;  %v452_v50 = vrot.slane %v451_v43, 1  ;;  %v433_v53 = vadd.f32 %v361_v41, %v357_v40  ;;  %v393_v20 = vld [vmem:[%s1912_s17 + $0x130] sm:$0xff] }
  0xa3   : > { %v562_v51 = vrot.slane %v561_v44, 2  ;;  %v589_v52 = vadd.f32 %v588_v45, %v587_v35  ;;  %v480_v54 = vrot.slane %v479_v46, 1  ;;  %v508_v55 = vrot.slane %v507_v47, 1  ;;  %v397_v24 = vld [vmem:[%s1912_s17 + $0x150] sm:$0xff] }
  0xa4   : > { %v535_v56 = vadd.f32 %v534_v48, %v533_v38  ;;  %v617_v57 = vadd.f32 %v616_v49, %v615_v39  ;;  %v453_v58 = vadd.f32 %v452_v50, %v451_v43  ;;  %v434_v63 = vrot.slane %v433_v53, 4  ;;  %v401_v25 = vld [vmem:[%s1912_s17 + $0x170] sm:$0xff] }
  0xa5   : > { %v563_v59 = vadd.f32 %v562_v51, %v561_v44  ;;  %v590_v60 = vrot.slane %v589_v52, 2  ;;  %v481_v0 = vadd.f32 %v480_v54, %v479_v46  ;;  %v509_v1 = vadd.f32 %v508_v55, %v507_v47  ;;  %v405_v33 = vld [vmem:[%s1912_s17 + $0x190] sm:$0xff] }
  0xa6   : > { %v536_v2 = vrot.slane %v535_v56, 1  ;;  %v618_v3 = vrot.slane %v617_v57, 2  ;;  %v741_v6 = vsel %vm740_vm0, %v453_v58, %v425_v42  ;;  %v435_v9 = vadd.f32 %v434_v63, %v433_v53  ;;  %v409_v34 = vld [vmem:[%s1912_s17 + $0x1b0] sm:$0xff] }
  0xa7   : > { %v564_v4 = vrot.slane %v563_v59, 1  ;;  %v591_v5 = vadd.f32 %v590_v60, %v589_v52  ;;  %v743_v12 = vsel %vm742_vm1, %v481_v0, %v741_v6  ;;  %v461_v15 = vadd.f32 %v369_v62, %v365_v61  ;;  %v413_v39 = vld [vmem:[%s1912_s17 + $0x1d0] sm:$0xff] }
  0xa8   : > { %v537_v10 = vadd.f32 %v536_v2, %v535_v56  ;;  %v619_v11 = vadd.f32 %v618_v3, %v617_v57  ;;  %v745_v18 = vsel %vm744_vm2, %v509_v1, %v743_v12  ;;  %v436_v21 = vrot.slane %v435_v9, 2  ;;  %v417_v40 = vld [vmem:[%s1912_s17 + $0x1f0] sm:$0xff] }
  0xa9   : > { %v565_v16 = vadd.f32 %v564_v4, %v563_v59  ;;  %v592_v17 = vrot.slane %v591_v5, 1  ;;  %v462_v26 = vrot.slane %v461_v15, 4  ;;  %v489_v27 = vadd.f32 %v377_v8, %v373_v7 }
  0xaa   : > { %v620_v22 = vrot.slane %v619_v11, 1  ;;  %v747_v23 = vsel %vm746_vm3, %v537_v10, %v745_v18  ;;  %v437_v30 = vadd.f32 %v436_v21, %v435_v9  ;;  %v517_v31 = vadd.f32 %v385_v14, %v381_v13 }
  0xab   : > { %v593_v28 = vadd.f32 %v592_v17, %v591_v5  ;;  %v749_v29 = vsel %vm748_vm4, %v565_v16, %v747_v23  ;;  %v463_v35 = vadd.f32 %v462_v26, %v461_v15  ;;  %v490_v36 = vrot.slane %v489_v27, 4 }
  0xac   : > { %v621_v32 = vadd.f32 %v620_v22, %v619_v11  ;;  %v545_v37 = vadd.f32 %v393_v20, %v389_v19  ;;  %v438_v41 = vrot.slane %v437_v30, 1  ;;  %v518_v42 = vrot.slane %v517_v31, 4 }
  0xad   : > { %v751_v38 = vsel %vm750_vm5, %v593_v28, %v749_v29  ;;  %v573_v43 = vadd.f32 %v401_v25, %v397_v24  ;;  %v464_v45 = vrot.slane %v463_v35, 2  ;;  %v491_v46 = vadd.f32 %v490_v36, %v489_v27 }
  0xae   : > { %v753_v44 = vsel %vm752_vm6, %v621_v32, %v751_v38  ;;  %v546_v47 = vrot.slane %v545_v37, 4  ;;  %v519_v48 = vadd.f32 %v518_v42, %v517_v31  ;;  %v601_v50 = vadd.f32 %v409_v34, %v405_v33  ;;  %v935_v38 = vld [vmem:[%s2245_s3] sm:$0xff] (!%p1229_p12) }
  0xaf   : > { %844 = vmatmul.mubr.f32.vlgmr.msra.gmra.mrb[0].mxu0 %v753_v44  ;;  %v574_v49 = vrot.slane %v573_v43, 4  ;;  %v465_v51 = vadd.f32 %v464_v45, %v463_v35  ;;  %v492_v52 = vrot.slane %v491_v46, 2  ;;  %v629_v54 = vadd.f32 %v417_v40, %v413_v39  ;;  %v643_v35 = vld [vmem:[#allocation2] sm:$0xff]  ;;  %v936_v39 = vld [vmem:[%s2245_s3 + $0x8] sm:$0xff] (!%p1229_p12)  ;;  %v937_v40 = vld [vmem:[%s2245_s3 + $0x10] sm:$0xff] (!%p1229_p12) }
  0xb0   : > { %v547_v53 = vadd.f32 %v546_v47, %v545_v37  ;;  %v439_v55 = vadd.f32 %v438_v41, %v437_v30  ;;  %v520_v56 = vrot.slane %v519_v48, 2  ;;  %v602_v58 = vrot.slane %v601_v50, 4  ;;  %v940_v47 = vld [vmem:[%s2245_s3 + $0x28] sm:$0xff] (!%p1229_p12) }
  0xb1   : > { %v575_v57 = vadd.f32 %v574_v49, %v573_v43  ;;  %v466_v59 = vrot.slane %v465_v51, 1  ;;  %v493_v60 = vadd.f32 %v492_v52, %v491_v46  ;;  %v630_v62 = vrot.slane %v629_v54, 4  ;;  %v938_v43 = vld [vmem:[%s2245_s3 + $0x18] sm:$0xff] (!%p1229_p12)  ;;  %v939_v46 = vld [vmem:[%s2245_s3 + $0x20] sm:$0xff] (!%p1229_p12)  ;;  %v1030_v49 = vld [vmem:[%s2247_s5 + $0x8] sm:$0xff] (!%p1229_p12) }
  0xb2   : > { %v548_v61 = vrot.slane %v547_v53, 2  ;;  %v521_v63 = vadd.f32 %v520_v56, %v519_v48  ;;  %v603_v1 = vadd.f32 %v602_v58, %v601_v50  ;;  %v1720_v41 = vmov (!%p1229_p12), 0.0|0.0   ;;  %v1029_v48 = vld [vmem:[%s2247_s5] sm:$0xff] (!%p1229_p12)  ;;  %v1031_v50 = vld [vmem:[%s2247_s5 + $0x10] sm:$0xff] (!%p1229_p12)  ;;  %v1034_v58 = vld [vmem:[%s2247_s5 + $0x28] sm:$0xff] (!%p1229_p12) }
  0xb3   : > { %v576_v0 = vrot.slane %v575_v57, 2  ;;  %v467_v2 = vadd.f32 %v466_v59, %v465_v51  ;;  %v494_v3 = vrot.slane %v493_v60, 1  ;;  %v631_v5 = vadd.f32 %v630_v62, %v629_v54  ;;  %1454 = vmatprep.subr.bf16.mxu0 (!%p1229_p12), %v1720_v41  ;;  %1478 = vmatprep.subr.bf16.mxu1 (!%p1229_p12), %v1720_v41  ;;  %v941_v54 = vld [vmem:[%s2245_s3 + $0x30] sm:$0xff] (!%p1229_p12) }
  0xb4   : > { %v549_v4 = vadd.f32 %v548_v61, %v547_v53  ;;  %v522_v6 = vrot.slane %v521_v63, 1  ;;  %v604_v8 = vrot.slane %v603_v1, 2  ;;  %v1455_v42 = vpack.c.bf16 (!%p1229_p12), %v936_v39, %v935_v38  ;;  %v1032_v53 = vld [vmem:[%s2247_s5 + $0x18] sm:$0xff] (!%p1229_p12)  ;;  %v944_v61 = vld [vmem:[%s2245_s3 + $0x48] sm:$0xff] (!%p1229_p12) }
  0xb5   : > { %v577_v7 = vadd.f32 %v576_v0, %v575_v57  ;;  %v495_v9 = vadd.f32 %v494_v3, %v493_v60  ;;  %v632_v11 = vrot.slane %v631_v5, 2  ;;  %v761_v12 = vsel %vm740_vm0, %v467_v2, %v439_v55  ;;  %v942_v55 = vld [vmem:[%s2245_s3 + $0x38] sm:$0xff] (!%p1229_p12)  ;;  %v1033_v57 = vld [vmem:[%s2247_s5 + $0x20] sm:$0xff] (!%p1229_p12)  ;;  %v945_v0 = vld [vmem:[%s2245_s3 + $0x50] sm:$0xff] (!%p1229_p12) }
  0xb6   : > { %v550_v10 = vrot.slane %v549_v4, 1  ;;  %v523_v13 = vadd.f32 %v522_v6, %v521_v63  ;;  %v605_v15 = vadd.f32 %v604_v8, %v603_v1  ;;  %v1722_v44 = vmov (!%p1229_p12), 0.0   ;;  %1456 = vmatpush3.bf16.msra.mxu0 (!%p1229_p12), %v1455_v42  ;;  %v943_v60 = vld [vmem:[%s2245_s3 + $0x40] sm:$0xff] (!%p1229_p12)  ;;  %v946_v1 = vld [vmem:[%s2245_s3 + $0x58] sm:$0xff] (!%p1229_p12)  ;;  %v949_v8 = vld [vmem:[%s2245_s3 + $0x70] sm:$0xff] (!%p1229_p12) }
  0xb7   : > { %v578_v14 = vrot.slane %v577_v7, 1  ;;  %v633_v17 = vadd.f32 %v632_v11, %v631_v5  ;;  %v762_v18 = vsel %vm742_vm1, %v495_v9, %v761_v12  ;;  %1368 = vmatprep.mubr.msk.f32.mxu0 (!%p1229_p12), %vm1721_vm7, %v1722_v44  ;;  %v1458_v45 = vpack.c.bf16 (!%p1229_p12), %v938_v43, %v937_v40  ;;  %1457 = vmatprep.subr.bf16.mxu0 (!%p1229_p12), %v1720_v41  ;;  %v947_v3 = vld [vmem:[%s2245_s3 + $0x60] sm:$0xff] (!%p1229_p12)  ;;  %v950_v9 = vld [vmem:[%s2245_s3 + $0x78] sm:$0xff] (!%p1229_p12) }
  0xb8   : > { %v551_v16 = vadd.f32 %v550_v10, %v549_v4  ;;  %v606_v20 = vrot.slane %v605_v15, 1  ;;  %v763_v21 = vsel %vm744_vm2, %v523_v13, %v762_v18  ;;  %v1461_v51 = vpack.c.bf16 (!%p1229_p12), %v940_v47, %v939_v46  ;;  %v948_v4 = vld [vmem:[%s2245_s3 + $0x68] sm:$0xff] (!%p1229_p12)  ;;  %v1035_v13 = vld [vmem:[%s2247_s5 + $0x30] sm:$0xff] (!%p1229_p12) }
  0xb9   : > { %v579_v19 = vadd.f32 %v578_v14, %v577_v7  ;;  %v634_v22 = vrot.slane %v633_v17, 1  ;;  %v1479_v52 = vpack.c.bf16 (!%p1229_p12), %v1030_v49, %v1029_v48  ;;  %v1482_v56 = vpack.c.bf16 (!%p1229_p12), %v1032_v53, %v1031_v50  ;;  %v1230_v7 = vld [vmem:[%s2244_s2] ss:$0 sm:$0xff] (!%p1229_p12)  ;;  %v1036_v14 = vld [vmem:[%s2247_s5 + $0x38] sm:$0xff] (!%p1229_p12) }
  0xba   : > { %v764_v23 = vsel %vm746_vm3, %v551_v16, %v763_v21  ;;  %v607_v24 = vadd.f32 %v606_v20, %v605_v15  ;;  %1459 = vmatpush3.bf16.msra.mxu0 (!%p1229_p12), %v1458_v45  ;;  %v1464_v59 = vpack.c.bf16 (!%p1229_p12), %v942_v55, %v941_v54  ;;  %v1485_v62 = vpack.c.bf16 (!%p1229_p12), %v1034_v58, %v1033_v57  ;;  %v1231_v16 = vld [vmem:[%s2246_s4] ss:$0 sm:$0xff] (!%p1229_p12) }
  0xbb   : > { %v765_v25 = vsel %vm748_vm4, %v579_v19, %v764_v23  ;;  %v635_v26 = vadd.f32 %v634_v22, %v633_v17  ;;  %1460 = vmatprep.subr.bf16.mxu0 (!%p1229_p12), %v1720_v41  ;;  %v1467_v63 = vpack.c.bf16 (!%p1229_p12), %v944_v61, %v943_v60  ;;  %v1470_v2 = vpack.c.bf16 (!%p1229_p12), %v946_v1, %v945_v0  ;;  %v1232_v21 = vld [vmem:[%s2248_s6] ss:$0 sm:$0xff] (!%p1229_p12) }
  0xbc   : > { %v766_v27 = vsel %vm750_vm5, %v607_v24, %v765_v25  ;;  %v1473_v5 = vpack.c.bf16 (!%p1229_p12), %v948_v4, %v947_v3  ;;  %v1476_v11 = vpack.c.bf16 (!%p1229_p12), %v950_v9, %v949_v8  ;;  %v1488_v15 = vpack.c.bf16 (!%p1229_p12), %v1036_v14, %v1035_v13 }
  0xbd   : > { %v767_v28 = vsel %vm752_vm6, %v635_v26, %v766_v27 }
  0xbe   : > { %914 = vmatmul.mubr.f32.vlgmr.msra.gmra.mrb[0].mxu1 %v767_v28  ;;  %1462 = vmatpush3.bf16.msra.mxu0 (!%p1229_p12), %v1461_v51 }
  0xbf   : > { %1387 = vmatprep.mubr.msk.f32.mxu1 (!%p1229_p12), %vm1721_vm7, %v1722_v44  ;;  %1480 = vmatpush3.bf16.msra.mxu1 (!%p1229_p12), %v1479_v52 }
  0xc0   : > { %1481 = vmatprep.subr.bf16.mxu1 (!%p1229_p12), %v1720_v41  ;;  %1463 = vmatprep.subr.bf16.mxu0 (!%p1229_p12), %v1720_v41 }
  0xc2   : > { %1465 = vmatpush3.bf16.msra.mxu0 (!%p1229_p12), %v1464_v59 }
  0xc3   : > { %1483 = vmatpush3.bf16.msra.mxu1 (!%p1229_p12), %v1482_v56  ;;  %1466 = vmatprep.subr.bf16.mxu0 (!%p1229_p12), %v1720_v41 }
  0xc4   : > { %1484 = vmatprep.subr.bf16.mxu1 (!%p1229_p12), %v1720_v41 }
  0xc6   : > { %1468 = vmatpush3.bf16.msra.mxu0 (!%p1229_p12), %v1467_v63 }
  0xc7   : > { %1486 = vmatpush3.bf16.msra.mxu1 (!%p1229_p12), %v1485_v62  ;;  %1469 = vmatprep.subr.bf16.mxu0 (!%p1229_p12), %v1720_v41 }
  0xc8   : > { %1487 = vmatprep.subr.bf16.mxu1 (!%p1229_p12), %v1720_v41 }
  0xca   : > { %1471 = vmatpush3.bf16.msra.mxu0 (!%p1229_p12), %v1470_v2 }
  0xcb   : > { %1472 = vmatprep.subr.bf16.mxu0 (!%p1229_p12), %v1720_v41  ;;  %1489 = vmatpush3.bf16.msra.mxu1 (!%p1229_p12), %v1488_v15 }
  0xce   : > { %1474 = vmatpush3.bf16.msra.mxu0 (!%p1229_p12), %v1473_v5 }
  0xcf   : > { %1475 = vmatprep.subr.bf16.mxu0 (!%p1229_p12), %v1720_v41 }
  0xd2   : > { %1477 = vmatpush3.bf16.msra.mxu0 (!%p1229_p12), %v1476_v11 }
 0x182   : > { %v1272_v29 = vpop.f32.mrb[0].mxu0 }
 0x183   : > { %v1273_v30 = vpop.f32.mrb[1].mxu0 }
 0x184   : > { %v1274_v31 = vadd.f32 %v1273_v30, %v1272_v29 }
 0x191   : > { %v1307_v32 = vpop.f32.mrb[0].mxu1 }
 0x192   : > { %v1308_v33 = vpop.f32.mrb[1].mxu1 }
 0x193   : > { %v1309_v34 = vadd.f32 %v1308_v33, %v1307_v32  ;;  %924 = sbr.rel (%p1229_p12) target bundleno = 852 (0x354), region = 64 }
 0x195   : > { %v916_v36 = vadd.f32 %v1309_v34, %v1274_v31 }
 0x197   : > { %v919_v37 = vadd.f32 %v916_v36, %v643_v35 }
 0x199   : > { %920 = vst [vmem:[#allocation2] sm:$0xff] %v919_v37 }
 0x1a0   : > { %v925_v6 = vld [vmem:[#allocation2] sm:$0xff] }
 0x1a1   : > { %v933_v10 = vadd.f32 %v1230_v7, %v925_v6 }
 0x1a3   : > { %v934_v12 = vmax.f32 %v933_v10, 0.0 }
 0x1a5   : > { %1369 = vmatmul.mubr.f32.vlgmr.msra.gmra.mrb[0].mxu0 %v934_v12 }
 0x278   : > { %v1024_v17 = vpop.f32.mrb[0].mxu0 }
 0x279   : > { %v1025_v18 = vadd.f32 %v1231_v16, %v1024_v17  ;;  %v1370_v19 = vpop.f32.mrb[1].mxu0 }
 0x27b   : > { %v1028_v20 = vmax.f32 %v1025_v18, 0.0 }
 0x27d   : > { %1388 = vmatmul.mubr.msk.f32.vlgmr.msra.gmra.mrb[0].mxu1 %vm1044_vm8, %v1028_v20 }
 0x350   : > { %v1114_v22 = vpop.f32.mrb[0].mxu1 }
 0x351   : > { %v1115_v23 = vadd.f32 %v1232_v21, %v1114_v22  ;;  %v1389_v24 = vpop.f32.mrb[1].mxu1 }
 0x353   : > { %1119 = vst.msk [vmem:[#allocation8] sm:$0xff] %vm1118_vm9, %v1115_v23 }
 0x354 PF: > { %s2260_s0 = sadd.s32 4294967295, %s1710_s29   ;;  %s1723_s14 = smov [#allocation8]  }
 0x355   : > { %p2198_p4 = scmp.eq.s32.totalorder %s2260_s0, 3  ;;  %s1129_s18 = sshll.u32 %s1723_s14, 4  ;;  %s1130_s18 = int_to_ptr.vmem [resolvable:$true] %s1129_s18 }
 0x356   : > { %s1626_s10 = scalar_lea.vmem %s1130_s18, 128  ;;  %p1633_p0 = scmp.lt.s32.totalorder %s1130_s18, %s1130_s18 }
 0x357   : > { %p1627_p8 = scmp.ne.s32.totalorder %s1130_s18, %s1626_s10  ;;  %p1634_p10 = scmp.lt.s32.totalorder %s1626_s10, %s1626_s10 }
 0x359   : > { %p1628_p2 = pnand %p1627_p8, %p2198_p4  ;;  %p1635_p5 = por %p1634_p10, %p1633_p0 }
 0x35b   : > { %p1629_p3 = pneg %p1628_p2 }
 0x35d   : > { %p1636_p6 = pnand %p1635_p5, %p1629_p3 }
 0x35f   : > { %1639 = shalt.err (!%p1636_p6)
}
 0x360   : > { %s1640_s20 = scalar_lea.hbm %s2249_s7, 128 }
 0x361   : > { %p1641_p11 = scmp.ne.s32.totalorder %s2249_s7, %s1640_s20  ;;  %p1646_p7 = scmp.lt.u32.totalorder %s1640_s20, %s2249_s7 }
 0x363   : > { %p1642_p13 = pnand %p1641_p11, %p2198_p4 }
 0x365   : > { %p1643_p1 = pneg %p1642_p13 }
 0x367   : > { %p1648_p9 = pnand %p1646_p7, %p1643_p1 }
 0x369   : > { %1651 = shalt.err (!%p1648_p9)
}
 0x36a   : > { %1495 = dma.vmem_to_hbm [thread:$0]  (%p2198_p4), %s1130_s18, 128, %s2249_s7, [#allocation5]  }
 0x36b   : > { %1685 = dma.done.wait (%p2198_p4), [#allocation5], 128  }
 0x36c   : > { %1687 = vsyncadd (%p2198_p4), [#allocation5], 4294967168 }
 0x36d PF: > { %s24_s29 = sadd.s32 1, %s1710_s29   ;;  %s2262_s24 = smov %s1694_s25 }
 0x36e   : > { %p21_p12 = scmp.ge.s32.totalorder %s24_s29, 6   ;;  %s2263_s25 = smov %s1698_s26 }
 0x36f   : > { %s2264_s26 = smov %s1815_s13  ;;  %s2265_s27 = smov %s1706_s28 }
 0x370   : > { %s2266_s28 = smov %s2268_s8  ;;  %23 = sbr.rel (!%p21_p12) target bundleno = 9 (0x9), region = 107 }
 0x377   :  { %1142 = vsyncpa [#allocation4], 1 }
 0x378   :  { %1144 = vsyncpa [#allocation4 + $0x1], 1 }
 0x379   :  { %1145 = vsyncpa [#allocation7], 1 }
 0x37a   :  { %1147 = vsyncpa [#allocation7 + $0x1], 1 }
 0x37b   :  { %1148 = vsyncpa [#allocation5], 1 }
 0x37c   :  { %1150 = vsyncpa [#allocation5 + $0x1], 1 }

</bundles_post_ra>
